<compile_context>
chip_gen: v7x
topology: tpu7x:2x2x1
jax: 0.10.0
libtpu: 0.0.40
codegen_flags: <defaults>
</compile_context>

<pallas_src>
import jax
import jax.numpy as jnp
from jax import lax
from jax.experimental import pallas as pl
from jax.experimental.pallas import tpu as pltpu


# ---------------------------------------------------------------------------
# Kernels
# ---------------------------------------------------------------------------

def _linear_kernel_single(x_ref, w_ref, b_ref, o_ref):
    """Single K step: no accumulator, write result + bias directly."""
    # x_ref: (B, K)  w_ref: (tn, K)  b_ref: (1, tn)  o_ref: (B, tn)
    xb = x_ref[...].astype(w_ref.dtype)
    y = lax.dot_general(
        xb, w_ref[...],
        dimension_numbers=(((1,), (1,)), ((), ())),   # contract x[1] with w[1] (N,K layout)
        preferred_element_type=jnp.float32,
    )
    o_ref[...] = (y + b_ref[...].astype(jnp.float32)).astype(o_ref.dtype)


def _make_linear_kernel_acc():
    """K-tiled variant: f32 accumulator, bias added once at the last K step."""

    def _kernel(x_ref, w_ref, b_ref, o_ref, acc_ref):
        # x_ref: (n_k, B, tk) fully resident; w_ref: (tn, tk); o_ref/acc_ref: (B, tn)
        k = pl.program_id(1)

        @pl.when(k == 0)
        def _():
            acc_ref[...] = jnp.zeros_like(acc_ref)

        xb = x_ref[k].astype(w_ref.dtype)              # (B, tk), leading-axis dynamic index
        acc_ref[...] += lax.dot_general(
            xb, w_ref[...],
            dimension_numbers=(((1,), (1,)), ((), ())),
            preferred_element_type=jnp.float32,
        )

        @pl.when(k == pl.num_programs(1) - 1)
        def _():
            o_ref[...] = (acc_ref[...] + b_ref[...].astype(jnp.float32)).astype(o_ref.dtype)

    return _kernel


# ---------------------------------------------------------------------------
# Wrapper helpers
# ---------------------------------------------------------------------------

def _vmem_capacity_bytes():
    try:
        return int(pltpu.get_tpu_info().vmem_capacity_bytes)
    except Exception:
        return 64 * 1024 * 1024   # conservative default (v7x per-TC VMEM)


def _round_up(v, m):
    return ((v + m - 1) // m) * m


def _largest_div_tile(dim, cap_elems):
    """Largest multiple of 128 that divides `dim` (dim % 128 == 0) and is <= cap."""
    t = min(dim, max(128, (cap_elems // 128) * 128))
    while dim % t != 0:
        t -= 128
    return t


# ---------------------------------------------------------------------------
# Public wrapper (forward pass of LinearLayerOnSecondDim)
# ---------------------------------------------------------------------------

def linear_on_second_dim(x, weight, bias, *,
                         weight_stream_dtype=None,
                         min_pallas_weight_bytes=2 * 1024 * 1024,
                         max_weight_tile_bytes=None,
                         weight_buffers=3):
    """x: (batch, seq_len, embed_dim); weight: (out_dim, in_dim) (PyTorch layout);
    bias: (out_dim,). Returns (batch, seq_len, out_dim // seq_len)."""
    batch, seq_len, embed_dim = x.shape
    in_dim = seq_len * embed_dim
    out_dim, w_in = weight.shape
    assert w_in == in_dim, "weight in_dim must equal seq_len * embed_dim"
    assert out_dim % seq_len == 0, "out_dim must be divisible by seq_len for the final view"

    x2d = x.reshape(batch, in_dim)                      # view(batch, -1)

    w = weight if weight_stream_dtype is None else weight.astype(weight_stream_dtype)
    w_item = jnp.dtype(w.dtype).itemsize
    weight_bytes = out_dim * in_dim * w_item

    # Small-weight fallback: pallas_call launch + single-step grid overhead dominates;
    # XLA's fused matmul wins at these sizes on all generations.
    if weight_bytes < min_pallas_weight_bytes:
        y2d = x2d @ weight.T + bias
        return y2d.reshape(batch, seq_len, out_dim // seq_len)

    # ---- pad to 128 multiples (once, in the wrapper) -------------------------------
    in_dim_p = _round_up(in_dim, 128)
    out_dim_p = _round_up(out_dim, 128)
    if in_dim_p != in_dim:
        x2d = jnp.pad(x2d, ((0, 0), (0, in_dim_p - in_dim)))
    if (in_dim_p, out_dim_p) != (in_dim, out_dim):
        w = jnp.pad(w, ((0, out_dim_p - out_dim), (0, in_dim_p - in_dim)))
        bias_p = jnp.pad(bias, (0, out_dim_p - out_dim))
    else:
        bias_p = bias
    b2d = bias_p.reshape(1, out_dim_p)

    # ---- per-generation VMEM budget & tile selection --------------------------------
    vmem_cap = _vmem_capacity_bytes()
    vmem_limit = int(vmem_cap * 3 // 4)                 # 96 MiB on 128 MiB chips, 48 MiB on v7x
    budget = vmem_limit // (2 * weight_buffers)         # headroom for x/bias/out/acc
    budget = min(budget, 16 * 1024 * 1024)              # 16 MiB/buffer cap (review guidance)
    if max_weight_tile_bytes is not None:
        budget = min(budget, max_weight_tile_bytes)
    budget = max(budget, 128 * 128 * w_item)

    # Grow tk (contraction) first — longer contiguous weight bursts, fewer K steps.
    tk_cap = max(128, budget // (128 * w_item))
    tk = _largest_div_tile(in_dim_p, tk_cap)
    tn_cap = max(128, budget // (tk * w_item))
    tn = _largest_div_tile(out_dim_p, tn_cap)
    # Keep >= 2 N tiles when possible so the "parallel" N axis feeds both v7x TCs.
    if out_dim_p // tn < 2 and out_dim_p >= 256:
        tn = _largest_div_tile(out_dim_p, out_dim_p // 2)

    n_n = out_dim_p // tn
    n_k = in_dim_p // tk
    total_steps = n_n * n_k
    wbuf = max(2, min(weight_buffers, total_steps))

    cost = pl.CostEstimate(
        flops=2 * batch * out_dim_p * in_dim_p,
        transcendentals=0,
        bytes_accessed=(out_dim_p * in_dim_p * w_item
                        + batch * in_dim_p * x2d.dtype.itemsize
                        + batch * out_dim_p * jnp.dtype(x.dtype).itemsize
                        + out_dim_p * jnp.dtype(bias_p.dtype).itemsize),
    )

    if n_k == 1:
        # Single K step: no accumulator, no pl.when phases.
        kernel = _linear_kernel_single
        grid = (n_n,)
        if total_steps > 1:
            w_spec = pl.BlockSpec((tn, in_dim_p), lambda j: (j, 0),
                                  pipeline_mode=pl.Buffered(wbuf))
        else:
            w_spec = pl.BlockSpec((tn, in_dim_p), lambda j: (j, 0))
        in_specs = [
            pl.BlockSpec((batch, in_dim_p), lambda j: (0, 0)),   # x fully resident
            w_spec,
            pl.BlockSpec((1, tn), lambda j: (0, j)),
        ]
        out_specs = pl.BlockSpec((batch, tn), lambda j: (0, j))
        scratch = []
        dims = ("parallel",)
        x_in = x2d
    else:
        # K-tiled reduction: x reshaped to (n_k, batch, tk) and kept fully resident.
        kernel = _make_linear_kernel_acc()
        grid = (n_n, n_k)                                # reduction axis last
        w_spec = pl.BlockSpec((tn, tk), lambda j, k: (j, k),
                              pipeline_mode=pl.Buffered(wbuf))
        in_specs = [
            pl.BlockSpec((n_k, batch, tk), lambda j, k: (0, 0, 0)),   # x resident
            w_spec,
            pl.BlockSpec((1, tn), lambda j, k: (0, j)),
        ]
        out_specs = pl.BlockSpec((batch, tn), lambda j, k: (0, j))
        scratch = [pltpu.VMEM((batch, tn), jnp.float32)]
        dims = ("parallel", "arbitrary")
        x_in = x2d.reshape(batch, n_k, tk).transpose(1, 0, 2)

    y2d_p = pl.pallas_call(
        kernel,
        out_shape=jax.ShapeDtypeStruct((batch, out_dim_p), x.dtype),
        grid_spec=pltpu.PrefetchScalarGridSpec(
            num_scalar_prefetch=0,
            grid=grid,
            in_specs=in_specs,
            out_specs=out_specs,
            scratch_shapes=scratch,
        ),
        compiler_params=pltpu.CompilerParams(
            dimension_semantics=dims,
            vmem_limit_bytes=vmem_limit,
        ),
        cost_estimate=cost,
    )(x_in, w, b2d)

    y2d = y2d_p[:, :out_dim] if out_dim_p != out_dim else y2d_p
    return y2d.reshape(batch, seq_len, out_dim // seq_len)


# ---------------------------------------------------------------------------
# Demo / self-test
# ---------------------------------------------------------------------------

if __name__ == "__main__":
    key = jax.random.PRNGKey(0)

    def make_inputs(key, batch, seq_len, embed_dim, out_dim):
        in_dim = seq_len * embed_dim
        kx, kw, kb = jax.random.split(key, 3)
        x = jax.random.normal(kx, (batch, seq_len, embed_dim), dtype=jnp.float32)
        bound = 1.0 / (in_dim ** 0.5)       # nn.Linear-style init
        wgt = jax.random.uniform(kw, (out_dim, in_dim), minval=-bound, maxval=bound,
                                 dtype=jnp.float32)
        b = jax.random.uniform(kb, (out_dim,), minval=-bound, maxval=bound,
                               dtype=jnp.float32)
        return x, wgt, b

    def ref(x, wgt, b):
        batch, seq_len, _ = x.shape
        return (x.reshape(batch, -1) @ wgt.T + b).reshape(batch, seq_len, -1)

    k1, k2 = jax.random.split(key)

    # Test 1: module demo shape (batch=2, seq=8, embed=32 -> in_dim=256, out_dim=128).
    # Force the Pallas path (weight is only 128 KiB, so default would take the
    # jnp.dot fallback); exercises the single-K-step (no-accumulator) kernel.
    x1, w1, b1 = make_inputs(k1, 2, 8, 32, 128)
    y1 = linear_on_second_dim(x1, w1, b1, min_pallas_weight_bytes=0)
    jax.block_until_ready(y1)
    assert y1.shape == (2, 8, 16)
    assert jnp.allclose(y1, ref(x1, w1, b1), atol=1e-4, rtol=1e-4)

    # Also check the small-weight fallback path (default threshold).
    y1f = linear_on_second_dim(x1, w1, b1)
    assert jnp.allclose(y1f, ref(x1, w1, b1), atol=1e-4, rtol=1e-4)

    # Test 2: larger shape (in_dim=1024, out_dim=512) with a tiny per-buffer tile
    # budget to force multiple N and K tiles -> exercises the accumulator kernel.
    x2, w2, b2 = make_inputs(k2, 2, 16, 64, 512)
    y2 = linear_on_second_dim(x2, w2, b2, min_pallas_weight_bytes=0,
                              max_weight_tile_bytes=128 * 1024)
    jax.block_until_ready(y2)
    assert y2.shape == (2, 16, 32)
    assert jnp.allclose(y2, ref(x2, w2, b2), atol=1e-4, rtol=1e-4)

    # Test 3: non-128-divisible dims (in_dim=192, out_dim=120) -> wrapper padding path.
    x3, w3, b3 = make_inputs(key, 2, 8, 24, 120)
    y3 = linear_on_second_dim(x3, w3, b3, min_pallas_weight_bytes=0)
    jax.block_until_ready(y3)
    assert y3.shape == (2, 8, 15)
    assert jnp.allclose(y3, ref(x3, w3, b3), atol=1e-4, rtol=1e-4)

    print("KERNEL_OK")
</pallas_src>

<mosaic_0001>
module attributes {stable_mosaic.version = 11 : i64} {
  func.func @_linear_kernel_single(%arg0: i32, %arg1: memref<2x256xf32, #tpu.memory_space<vmem>>, %arg2: memref<128x256xf32, #tpu.memory_space<vmem>>, %arg3: memref<1x128xf32, #tpu.memory_space<vmem>>, %arg4: memref<2x128xf32, #tpu.memory_space<vmem>>) attributes {dimension_semantics = [#tpu.dimension_semantics<parallel>], iteration_bounds = array<i64: 1>, scalar_prefetch = 0 : i64, scratch_operands = 0 : i64, tpu.core_type = #tpu.core_type<tc>, window_params = [{pipeline_mode = #tpu.pipeline_mode<synchronous>, transform_indices = @transform_0, window_bounds = array<i64: 2, 256>}, {transform_indices = @transform_1, window_bounds = array<i64: 128, 256>}, {transform_indices = @transform_2, window_bounds = array<i64: 1, 128>}, {transform_indices = @transform_3, window_bounds = array<i64: 2, 128>}]} {
    %c0 = arith.constant 0 : index
    %c0_0 = arith.constant 0 : index
    %0 = vector.load %arg1[%c0, %c0_0] : memref<2x256xf32, #tpu.memory_space<vmem>>, vector<2x256xf32>
    %c0_1 = arith.constant 0 : index
    %c0_2 = arith.constant 0 : index
    %1 = vector.load %arg2[%c0_1, %c0_2] : memref<128x256xf32, #tpu.memory_space<vmem>>, vector<128x256xf32>
    %cst = arith.constant dense<0.000000e+00> : vector<2x128xf32>
    %2 = tpu.matmul %0, %1, %cst {dimension_numbers = #tpu.dot_dimension_numbers<[1], [1], [0], [0], [0, 0, 1, 0], [], []>} : vector<2x256xf32>, vector<128x256xf32>, vector<2x128xf32> -> vector<2x128xf32>
    %c0_3 = arith.constant 0 : index
    %c0_4 = arith.constant 0 : index
    %3 = vector.load %arg3[%c0_3, %c0_4] : memref<1x128xf32, #tpu.memory_space<vmem>>, vector<1x128xf32>
    %4 = vector.broadcast %3 : vector<1x128xf32> to vector<2x128xf32>
    %5 = arith.addf %2, %4 : vector<2x128xf32>
    %c0_5 = arith.constant 0 : index
    %c0_6 = arith.constant 0 : index
    %6 = vector.load %arg4[%c0_5, %c0_6] : memref<2x128xf32, #tpu.memory_space<vmem>>, vector<2x128xf32>
    tpu.vector_store %arg4[%c0_5, %c0_6], %5 {strides = array<i32>} : memref<2x128xf32, #tpu.memory_space<vmem>>, vector<2x128xf32>,
    return
  }
  func.func @transform_0(%arg0: i32) -> (i32, i32) {
    %c0_i32 = arith.constant 0 : i32
    %c0_i32_0 = arith.constant 0 : i32
    %c0_i32_1 = arith.constant 0 : i32
    return %c0_i32, %c0_i32_0 : i32, i32
  }
  func.func @transform_1(%arg0: i32) -> (i32, i32) {
    %c0_i32 = arith.constant 0 : i32
    %c0_i32_0 = arith.constant 0 : i32
    return %arg0, %c0_i32 : i32, i32
  }
  func.func @transform_2(%arg0: i32) -> (i32, i32) {
    %c0_i32 = arith.constant 0 : i32
    %c0_i32_0 = arith.constant 0 : i32
    return %c0_i32, %arg0 : i32, i32
  }
  func.func @transform_3(%arg0: i32) -> (i32, i32) {
    %c0_i32 = arith.constant 0 : i32
    %c0_i32_0 = arith.constant 0 : i32
    return %c0_i32, %arg0 : i32, i32
  }
}

</mosaic_0001>

<bundles_post_ra>
// kernel: tpu_custom_call.1
= control target key start
LH: loop header
LB: loop body
LE: loop exit
PB: predicated region body
PF: predicated region fallthrough
CT: control target
= control target key end

     0   :  { %8 = vsyncpa [#allocation3], 0  ;;  %s361_s0 = inlined_call_operand.hbm [shape: f32[2,256], index: 0, kind: input, shape index: {}]   ;;  %s362_s1 = inlined_call_operand.hbm [shape: f32[128,256], index: 1, kind: input, shape index: {}]   ;;  %s363_s2 = inlined_call_operand.vmem [shape: f32[1,128], index: 2, kind: input, shape index: {}]   ;;  %s364_s3 = inlined_call_operand.hbm [shape: f32[2,128], index: 3, kind: output, shape index: {}]  }
   0x1   :  { %9 = vsyncpa [#allocation6], 0 }
   0x2   :  { %10 = vsyncpa [#allocation4], 0  ;;  %s290_s12 = smov [#allocation2]   ;;  %s291_s14 = smov [#allocation5]  }
   0x3   :  { %s17_s13 = sshll.u32 %s290_s12, 4  ;;  %s26_s15 = sshll.u32 %s291_s14, 4  ;;  %s18_s13 = int_to_ptr.vmem [resolvable:$true] %s17_s13  ;;  %s315_s15 = int_to_ptr.vmem [resolvable:$true] %s26_s15 }
   0x4   :  { %s218_s18 = scalar_lea.hbm %s361_s0, 64 }
   0x5   :  { %p219_p0 = scmp.ne.s32.totalorder %s361_s0, %s218_s18  ;;  %p222_p1 = scmp.lt.u32.totalorder %s218_s18, %s361_s0 }
   0x7   :  { %p224_p2 = pnand %p222_p1, %p219_p0 }
   0x9   :  { %227 = shalt.err (!%p224_p2)
}
   0xa   :  { %s228_s23 = scalar_lea.vmem %s18_s13, 64  ;;  %p233_p4 = scmp.lt.s32.totalorder %s18_s13, %s18_s13 }
   0xb   :  { %p229_p3 = scmp.ne.s32.totalorder %s18_s13, %s228_s23  ;;  %p234_p5 = scmp.lt.s32.totalorder %s228_s23, %s228_s23 }
   0xd   :  { %p235_p6 = por %p234_p5, %p233_p4 }
   0xf   :  { %p236_p7 = pnand %p235_p6, %p229_p3 }
  0x11   :  { %239 = shalt.err (!%p236_p7)
}
  0x12   :  { %20 = dma.hbm_to_vmem [thread:$0]  %s361_s0, 64, %s18_s13, [#allocation3]  }
  0x13   :  { %s240_s28 = scalar_lea.hbm %s362_s1, 4096 }
  0x14   :  { %p241_p8 = scmp.ne.s32.totalorder %s362_s1, %s240_s28  ;;  %p244_p9 = scmp.lt.u32.totalorder %s240_s28, %s362_s1 }
  0x16   :  { %p246_p10 = pnand %p244_p9, %p241_p8 }
  0x18   :  { %249 = shalt.err (!%p246_p10)
}
  0x19   :  { %s250_s6 = scalar_lea.vmem %s315_s15, 4096  ;;  %p255_p12 = scmp.lt.s32.totalorder %s315_s15, %s315_s15 }
  0x1a   :  { %p251_p11 = scmp.ne.s32.totalorder %s315_s15, %s250_s6  ;;  %p256_p13 = scmp.lt.s32.totalorder %s250_s6, %s250_s6 }
  0x1c   :  { %p257_p0 = por %p256_p13, %p255_p12 }
  0x1e   :  { %p258_p1 = pnand %p257_p0, %p251_p11 }
  0x20   :  { %261 = shalt.err (!%p258_p1)
}
  0x21   :  { %s292_s0 = smov 256   ;;  %s293_s7 = smov 16  }
  0x22   :  { %32 = dma.hbm_to_vmem [thread:$0]  %s362_s1, 4096, %s315_s15, [#allocation6], %s292_s0, %s292_s0, %s293_s7  }
  0x23   :  { %284 = dma.done.wait [#allocation3], 64  }
  0x24   :  { %285 = vsyncadd [#allocation3], 4294967232 }
  0x25   :  { %286 = dma.done.wait [#allocation6], 4096  }
  0x26   :  { %287 = vsyncadd [#allocation6], 4294963200  ;;  %v43_v0 = vld [vmem:[#allocation5 + $0x8] sm:$0xff]  ;;  %v45_v1 = vld [vmem:[#allocation5 + $0x18] sm:$0xff]  ;;  %s294_s11 = smov [#allocation7]  }
  0x27   :  { %v42_v2 = vld [vmem:[#allocation5] sm:$0xff]  ;;  %v181_v3 = vpack.c.bf16 %v45_v1, %v43_v0  ;;  %v44_v4 = vld [vmem:[#allocation5 + $0x10] sm:$0xff]  ;;  %v47_v5 = vld [vmem:[#allocation5 + $0x28] sm:$0xff]  ;;  %s169_s12 = sshll.u32 %s294_s11, 4  ;;  %s170_s12 = int_to_ptr.vmem [resolvable:$true] %s169_s12 }
  0x28   :  { %v49_v6 = vld [vmem:[#allocation5 + $0x38] sm:$0xff]  ;;  %v183_v7 = vpack.c.bf16 %v44_v4, %v42_v2  ;;  %v46_v9 = vld [vmem:[#allocation5 + $0x20] sm:$0xff]  ;;  %v48_v10 = vld [vmem:[#allocation5 + $0x30] sm:$0xff]  ;;  %s262_s13 = scalar_lea.vmem %s170_s12, 32  ;;  %p267_p3 = scmp.lt.s32.totalorder %s170_s12, %s170_s12 }
  0x29   :  { %v185_v8 = vpack.c.bf16 %v49_v6, %v47_v5  ;;  %182 = vmatprep.subr.bf16.mxu0 %v181_v3  ;;  %v51_v11 = vld [vmem:[#allocation5 + $0x48] sm:$0xff]  ;;  %v53_v12 = vld [vmem:[#allocation5 + $0x58] sm:$0xff]  ;;  %v187_v13 = vpack.c.bf16 %v48_v10, %v46_v9  ;;  %v50_v17 = vld [vmem:[#allocation5 + $0x40] sm:$0xff]  ;;  %p263_p2 = scmp.ne.s32.totalorder %s170_s12, %s262_s13  ;;  %p268_p4 = scmp.lt.s32.totalorder %s262_s13, %s262_s13 }
  0x2a   :  { %184 = vmatpush1.bf16.xpose.msra.mxu0 %v183_v7  ;;  %v189_v14 = vpack.c.bf16 %v53_v12, %v51_v11  ;;  %v180_v15 = vld.sshfl [vmem:[#allocation2] sm:$0x33 pattern:$0x76325410]  ;;  %v52_v18 = vld [vmem:[#allocation5 + $0x50] sm:$0xff]  ;;  %v55_v19 = vld [vmem:[#allocation5 + $0x68] sm:$0xff] }
  0x2b   :  { %186 = vmatprep.subr.bf16.mxu0 %v185_v8  ;;  %v89_v16 = vcombine.high %v180_v15, %v180_v15  ;;  %v57_v20 = vld [vmem:[#allocation5 + $0x78] sm:$0xff]  ;;  %v191_v21 = vpack.c.bf16 %v52_v18, %v50_v17  ;;  %v54_v23 = vld [vmem:[#allocation5 + $0x60] sm:$0xff]  ;;  %v56_v24 = vld [vmem:[#allocation5 + $0x70] sm:$0xff]  ;;  %p269_p5 = por %p268_p4, %p267_p3 }
  0x2c   :  { %v193_v22 = vpack.c.bf16 %v57_v20, %v55_v19  ;;  %v59_v25 = vld [vmem:[#allocation5 + $0x88] sm:$0xff]  ;;  %v61_v26 = vld [vmem:[#allocation5 + $0x98] sm:$0xff]  ;;  %v195_v27 = vpack.c.bf16 %v56_v24, %v54_v23  ;;  %v58_v29 = vld [vmem:[#allocation5 + $0x80] sm:$0xff] }
  0x2d   :  { %156 = vmatprep.mubr.f32.mxu0 %v89_v16  ;;  %v197_v28 = vpack.c.bf16 %v61_v26, %v59_v25  ;;  %v60_v30 = vld [vmem:[#allocation5 + $0x90] sm:$0xff]  ;;  %v63_v31 = vld [vmem:[#allocation5 + $0xa8] sm:$0xff]  ;;  %v65_v32 = vld [vmem:[#allocation5 + $0xb8] sm:$0xff]  ;;  %p270_p6 = pnand %p269_p5, %p263_p2 }
  0x2e   :  { %v199_v33 = vpack.c.bf16 %v60_v30, %v58_v29  ;;  %v201_v34 = vpack.c.bf16 %v65_v32, %v63_v31  ;;  %v62_v35 = vld [vmem:[#allocation5 + $0xa0] sm:$0xff]  ;;  %v64_v36 = vld [vmem:[#allocation5 + $0xb0] sm:$0xff]  ;;  %v67_v37 = vld [vmem:[#allocation5 + $0xc8] sm:$0xff] }
  0x2f   :  { %v69_v38 = vld [vmem:[#allocation5 + $0xd8] sm:$0xff]  ;;  %v203_v39 = vpack.c.bf16 %v64_v36, %v62_v35  ;;  %v66_v41 = vld [vmem:[#allocation5 + $0xc0] sm:$0xff]  ;;  %v68_v42 = vld [vmem:[#allocation5 + $0xd0] sm:$0xff] }
  0x30   :  { %v205_v40 = vpack.c.bf16 %v69_v38, %v67_v37  ;;  %v71_v43 = vld [vmem:[#allocation5 + $0xe8] sm:$0xff]  ;;  %v73_v44 = vld [vmem:[#allocation5 + $0xf8] sm:$0xff]  ;;  %v207_v45 = vpack.c.bf16 %v68_v42, %v66_v41  ;;  %v70_v47 = vld [vmem:[#allocation5 + $0xe0] sm:$0xff] }
  0x31   :  { %v209_v46 = vpack.c.bf16 %v73_v44, %v71_v43  ;;  %v72_v48 = vld [vmem:[#allocation5 + $0xf0] sm:$0xff]  ;;  %v179_v50 = vld [vmem:[%s363_s2] ss:$0 sm:$0xff] }
  0x32   :  { %188 = vmatpush1.bf16.xpose.msra.mxu0 %v187_v13  ;;  %v211_v49 = vpack.c.bf16 %v72_v48, %v70_v47 }
  0x33   :  { %190 = vmatprep.subr.bf16.mxu0 %v189_v14 }
  0x3a   :  { %192 = vmatpush1.bf16.xpose.msra.mxu0 %v191_v21 }
  0x3b   :  { %194 = vmatprep.subr.bf16.mxu0 %v193_v22 }
  0x42   :  { %196 = vmatpush1.bf16.xpose.msra.mxu0 %v195_v27 }
  0x43   :  { %198 = vmatprep.subr.bf16.mxu0 %v197_v28 }
  0x4a   :  { %200 = vmatpush1.bf16.xpose.msra.mxu0 %v199_v33 }
  0x4b   :  { %202 = vmatprep.subr.bf16.mxu0 %v201_v34 }
  0x52   :  { %204 = vmatpush1.bf16.xpose.msra.mxu0 %v203_v39 }
  0x53   :  { %206 = vmatprep.subr.bf16.mxu0 %v205_v40 }
  0x5a   :  { %208 = vmatpush1.bf16.xpose.msra.mxu0 %v207_v45 }
  0x5b   :  { %210 = vmatprep.subr.bf16.mxu0 %v209_v46 }
  0x62   :  { %212 = vmatpush1.bf16.xpose.msra.mxu0 %v211_v49 }
  0x69   :  { %157 = vmatmul.mubr.f32.vlgmr.msra.gmra.mrb[0].mxu0 %v180_v15 }
 0x13c   :  { %v158_v51 = vpop.f32.mrb[0].mxu0 }
 0x13d   :  { %v159_v52 = vadd.f32 %v179_v50, %v158_v51  ;;  %v160_v53 = vpop.f32.mrb[1].mxu0 }
 0x13f   :  { %162 = vst [vmem:[#allocation7] sm:$0x3] %v159_v52 }
 0x140   :  { %273 = shalt.err (!%p270_p6)
}
 0x141   :  { %s274_s16 = scalar_lea.hbm %s364_s3, 32 }
 0x142   :  { %p275_p7 = scmp.ne.s32.totalorder %s364_s3, %s274_s16  ;;  %p278_p8 = scmp.lt.u32.totalorder %s274_s16, %s364_s3 }
 0x144   :  { %p280_p9 = pnand %p278_p8, %p275_p7 }
 0x146   :  { %283 = shalt.err (!%p280_p9)
}
 0x147   :  { %172 = dma.vmem_to_hbm [thread:$0]  %s170_s12, 32, %s364_s3, [#allocation4]  }
 0x148   :  { %288 = dma.done.wait [#allocation4], 32  }
 0x149   :  { %289 = vsyncadd [#allocation4], 4294967264 }
 0x14a   :  { %176 = vsyncpa [#allocation3], 1 }
 0x14b   :  { %177 = vsyncpa [#allocation6], 1 }
 0x14c   :  { %178 = vsyncpa [#allocation4], 1 }

</bundles_post_ra>
